<compile_context>
chip_gen: v6e
topology: v6e:2x2x1
jax: 0.10.0
libtpu: 0.0.40
codegen_flags: <defaults>
</compile_context>

<pallas_src>
import math

import jax
import jax.numpy as jnp
from jax.experimental import pallas as pl
from jax.experimental.pallas import tpu as pltpu

LANE = 128


def _round_up(x, m):
    return ((x + m - 1) // m) * m


def _cdiv(a, b):
    return -(-a // b)


# ----------------------------- Pallas kernel -------------------------------

def _make_mlp_kernel(num_layers):
    """Fused MLP body.

    Ref layout: (x_ref, w0, b0, w1, b1, ..., w{L-1}, b{L-1}, o_ref).
    Hidden layers: Linear (BN folded into w/b) -> ReLU (dropout == identity).
    Last layer:    Linear -> log_softmax.  Padded class columns are excluded
    via a -1e30 bias baked in at parameter-build time (no in-kernel mask).
    """

    def kernel(x_ref, *refs):
        o_ref = refs[-1]
        wb = refs[:-1]

        # Raw f32 rows, cast to bf16 in-kernel (no host-side pad/cast pass).
        h = x_ref[...].astype(jnp.bfloat16)              # [TILE_N, F_in]
        for i in range(num_layers - 1):
            w = wb[2 * i][...]                           # bf16 [K, H_pad]
            b = wb[2 * i + 1][...]                       # f32  [1, H_pad]
            y = jnp.dot(h, w, preferred_element_type=jnp.float32) + b
            h = jnp.maximum(y, 0.0).astype(jnp.bfloat16)
            # dropout: identity in eval mode.
            # TODO(synk): training-mode dropout (pltpu PRNG masking) not implemented.

        w = wb[2 * (num_layers - 1)][...]
        b = wb[2 * (num_layers - 1) + 1][...]
        logits = jnp.dot(h, w, preferred_element_type=jnp.float32) + b

        # Padded class columns already hold -1e30 (from the bias) -> exp()==0.
        m = jnp.max(logits, axis=-1, keepdims=True)
        s = logits - m
        lse = jnp.log(jnp.sum(jnp.exp(s), axis=-1, keepdims=True))
        o_ref[...] = (s - lse).astype(o_ref.dtype)

    return kernel


# ------------------------------ wrapper -------------------------------------

def _choose_row_tiling(n, tile_n):
    """Pick a row tile that (a) is a multiple of 16, (b) keeps N-padding waste
    under 16 rows per tile, and (c) prefers an even tile count (v7x has 2 TCs,
    so an odd/unit 'parallel' grid would leave one idle for large N)."""
    tile_n = max(16, _round_up(int(tile_n), 16))
    num_tiles = max(1, _cdiv(n, tile_n))
    if num_tiles > 1 and num_tiles % 2 == 1:
        num_tiles += 1
    tile = max(16, _round_up(_cdiv(n, num_tiles), 16))
    n_pad = tile * num_tiles
    return tile, n_pad, num_tiles


def mlp_apply(params, x, *, out_channels, tile_n=1024, buffered_weights=True):
    """params: list of {'w': bf16 [K, Fout_pad], 'b': f32 [1, Fout_pad]}."""
    n, f_in = x.shape
    assert params[0]["w"].shape[0] == f_in
    c_pad = params[-1]["w"].shape[1]
    num_layers = len(params)

    tile, n_pad, num_tiles = _choose_row_tiling(n, tile_n)

    # Minimal row pad only (no feature-dim inflation, no dtype pre-pass).
    x_p = x if n_pad == n else jnp.pad(x, ((0, n_pad - n), (0, 0)))

    # Resident weights/biases: constant index_map -> fetched once, stay in
    # VMEM across row tiles; single-buffer them (double-buffering buys nothing).
    resident = dict(pipeline_mode=pl.Buffered(1)) if buffered_weights else {}

    in_specs = [pl.BlockSpec((tile, f_in), lambda i: (i, 0))]
    args = [x_p]
    weight_bytes = 0
    flops = 0
    for layer in params:
        w, b = layer["w"], layer["b"]
        in_specs.append(pl.BlockSpec(w.shape, lambda i: (0, 0), **resident))
        in_specs.append(pl.BlockSpec(b.shape, lambda i: (0, 0), **resident))
        args.extend([w, b])
        weight_bytes += w.size * w.dtype.itemsize + b.size * b.dtype.itemsize
        flops += 2 * n_pad * w.shape[0] * w.shape[1]

    max_w = max([f_in] + [l["w"].shape[1] for l in params])
    in_bytes = n_pad * f_in * x_p.dtype.itemsize
    out_bytes = n_pad * c_pad * 2                         # bf16 output

    # VMEM footprint estimate (headroom in case weights end up double-buffered)
    # -> scoped limit derived per-chip instead of a hard 32 MiB cap.
    # TODO(synk): stream weights per layer (pltpu.emit_pipeline) when
    # 2*weight_bytes no longer fits the budget (very wide hidden layers).
    est = (2 * weight_bytes
           + 2 * tile * f_in * x_p.dtype.itemsize         # input double-buffer
           + 2 * tile * c_pad * 2                         # output double-buffer
           + 4 * tile * max_w * 4)                        # live f32 intermediates
    try:
        cap = int(pltpu.get_tpu_info().vmem_capacity_bytes)
    except Exception:
        cap = 64 * 1024 * 1024                            # conservative (v7x)
    cap = max(cap, 64 * 1024 * 1024)
    vmem_limit = int(min(max(est + (4 << 20), 32 << 20), cap - (8 << 20)))

    out = pl.pallas_call(
        _make_mlp_kernel(num_layers),
        out_shape=jax.ShapeDtypeStruct((n_pad, c_pad), jnp.bfloat16),
        grid=(num_tiles,),
        in_specs=in_specs,
        out_specs=pl.BlockSpec((tile, c_pad), lambda i: (i, 0)),
        compiler_params=pltpu.CompilerParams(
            dimension_semantics=("parallel",),
            vmem_limit_bytes=vmem_limit,
        ),
        cost_estimate=pl.CostEstimate(
            flops=flops,
            transcendentals=n_pad * c_pad,
            bytes_accessed=in_bytes + weight_bytes + out_bytes,
        ),
    )(*args)

    return out[:n, :out_channels]


# --------------------------- parameter building ------------------------------

def init_mlp_params(key, in_channels, hidden_channels, out_channels, num_layers):
    """PyTorch-style init; BN folded into (w, b); hidden/output feature dims
    zero-padded to 128 lanes; input feature dim left unpadded (kernel reads
    raw x).  Last-layer padded bias columns hold -1e30 so log_softmax ignores
    padded classes without an in-kernel mask."""
    dims = [in_channels] + [hidden_channels] * (num_layers - 1) + [out_channels]
    # TODO(synk): pad to 256 on v6e/v7x if a wide-hidden config ever becomes
    # MXU-bound (irrelevant at these mem-bound sizes); keep 128 on v5e.
    dims_pad = [dims[0]] + [_round_up(d, LANE) for d in dims[1:]]
    params = []
    for i in range(num_layers):
        fan_in, fan_out = dims[i], dims[i + 1]
        fi_p, fo_p = dims_pad[i], dims_pad[i + 1]
        key, kw, kb, kg, kbeta = jax.random.split(key, 5)
        bound = 1.0 / math.sqrt(fan_in)
        w = jax.random.uniform(kw, (fan_in, fan_out), jnp.float32, -bound, bound)
        b = jax.random.uniform(kb, (fan_out,), jnp.float32, -bound, bound)
        if i < num_layers - 1:
            # BatchNorm1d (inference): affine non-trivial, running stats at
            # fresh-init defaults (mean=0, var=1).
            gamma = 1.0 + 0.1 * jax.random.normal(kg, (fan_out,), jnp.float32)
            beta = 0.1 * jax.random.normal(kbeta, (fan_out,), jnp.float32)
            running_mean = jnp.zeros((fan_out,), jnp.float32)
            running_var = jnp.ones((fan_out,), jnp.float32)
            eps = 1e-5
            scale = gamma / jnp.sqrt(running_var + eps)
            shift = beta - running_mean * scale
            # Fold: (x@w + b)*scale + shift == x@(w*scale) + (b*scale + shift)
            w = w * scale[None, :]
            b = b * scale + shift
        w_p = jnp.zeros((fi_p, fo_p), jnp.float32).at[:fan_in, :fan_out].set(w)
        if i == num_layers - 1:
            # Padded class columns: weight cols are zero, so their logit equals
            # the bias; bake -1e30 there (replaces the in-kernel iota/where).
            b_p = jnp.full((1, fo_p), -1e30, jnp.float32).at[0, :fan_out].set(b)
        else:
            b_p = jnp.zeros((1, fo_p), jnp.float32).at[0, :fan_out].set(b)
        params.append({"w": w_p.astype(jnp.bfloat16), "b": b_p})
    return params


def mlp_reference(params, x, out_channels):
    """Pure-JAX reference with the same bf16-matmul / f32-elementwise numerics."""
    h = x.astype(jnp.bfloat16)
    for layer in params[:-1]:
        y = jnp.dot(h, layer["w"], preferred_element_type=jnp.float32) + layer["b"]
        h = jnp.maximum(y, 0.0).astype(jnp.bfloat16)
    last = params[-1]
    logits = jnp.dot(h, last["w"], preferred_element_type=jnp.float32) + last["b"]
    return jax.nn.log_softmax(logits[:, :out_channels], axis=-1)


# ---------------------------------- main ------------------------------------

if __name__ == "__main__":
    key = jax.random.PRNGKey(0)
    k_params, k_x = jax.random.split(key)

    N = 8              # samples / nodes
    in_channels = 16
    hidden_channels = 32
    out_channels = 8   # classes
    num_layers = 3
    dropout = 0.5      # identity at inference

    params = init_mlp_params(k_params, in_channels, hidden_channels,
                             out_channels, num_layers)
    x = jax.random.normal(k_x, (N, in_channels), jnp.float32)

    fwd = jax.jit(mlp_apply,
                  static_argnames=("out_channels", "tile_n", "buffered_weights"))
    try:
        out = jax.block_until_ready(fwd(params, x, out_channels=out_channels))
    except Exception:
        # Fallback for JAX versions where pipeline_mode=pl.Buffered(1) is not
        # accepted on resident inputs: use default (double-buffered) specs.
        out = jax.block_until_ready(
            fwd(params, x, out_channels=out_channels, buffered_weights=False))

    assert out.shape == (N, out_channels)
    out_f32 = out.astype(jnp.float32)

    # log_softmax rows exponentiate-sum to 1 (bf16-output tolerance)
    row_sums = jnp.sum(jnp.exp(out_f32), axis=-1)
    assert bool(jnp.all(jnp.abs(row_sums - 1.0) < 1e-2))

    # matches the pure-JAX reference (same bf16 matmul precision)
    ref = mlp_reference(params, x, out_channels)
    err = float(jnp.max(jnp.abs(out_f32 - ref)))
    assert err < 5e-2, err

    print("KERNEL_OK")
</pallas_src>

<mosaic_0001>
module attributes {stable_mosaic.version = 11 : i64} {
  func.func @kernel(%arg0: i32, %arg1: memref<16x16xf32, #tpu.memory_space<vmem>>, %arg2: memref<16x128xbf16, #tpu.memory_space<vmem>>, %arg3: memref<1x128xf32, #tpu.memory_space<vmem>>, %arg4: memref<128x128xbf16, #tpu.memory_space<vmem>>, %arg5: memref<1x128xf32, #tpu.memory_space<vmem>>, %arg6: memref<128x128xbf16, #tpu.memory_space<vmem>>, %arg7: memref<1x128xf32, #tpu.memory_space<vmem>>, %arg8: memref<16x128xbf16, #tpu.memory_space<vmem>>) attributes {dimension_semantics = [#tpu.dimension_semantics<parallel>], iteration_bounds = array<i64: 1>, scalar_prefetch = 0 : i64, scratch_operands = 0 : i64, tpu.core_type = #tpu.core_type<tc>, window_params = [{transform_indices = @transform_0, window_bounds = array<i64: 16, 16>}, {pipeline_mode = #tpu.pipeline_mode<synchronous>, transform_indices = @transform_1, window_bounds = array<i64: 16, 128>}, {pipeline_mode = #tpu.pipeline_mode<synchronous>, transform_indices = @transform_2, window_bounds = array<i64: 1, 128>}, {pipeline_mode = #tpu.pipeline_mode<synchronous>, transform_indices = @transform_3, window_bounds = array<i64: 128, 128>}, {pipeline_mode = #tpu.pipeline_mode<synchronous>, transform_indices = @transform_4, window_bounds = array<i64: 1, 128>}, {pipeline_mode = #tpu.pipeline_mode<synchronous>, transform_indices = @transform_5, window_bounds = array<i64: 128, 128>}, {pipeline_mode = #tpu.pipeline_mode<synchronous>, transform_indices = @transform_6, window_bounds = array<i64: 1, 128>}, {transform_indices = @transform_7, window_bounds = array<i64: 16, 128>}]} {
    %c0 = arith.constant 0 : index
    %c0_0 = arith.constant 0 : index
    %0 = vector.load %arg1[%c0, %c0_0] : memref<16x16xf32, #tpu.memory_space<vmem>>, vector<16x16xf32>
    %1 = arith.truncf %0 : vector<16x16xf32> to vector<16x16xbf16>
    %c0_1 = arith.constant 0 : index
    %c0_2 = arith.constant 0 : index
    %2 = vector.load %arg2[%c0_1, %c0_2] : memref<16x128xbf16, #tpu.memory_space<vmem>>, vector<16x128xbf16>
    %c0_3 = arith.constant 0 : index
    %c0_4 = arith.constant 0 : index
    %3 = vector.load %arg3[%c0_3, %c0_4] : memref<1x128xf32, #tpu.memory_space<vmem>>, vector<1x128xf32>
    %cst = arith.constant dense<0.000000e+00> : vector<16x128xf32>
    %4 = tpu.matmul %1, %2, %cst {dimension_numbers = #tpu.dot_dimension_numbers<[1], [0], [0], [1], [0, 0, 1, 1], [], []>} : vector<16x16xbf16>, vector<16x128xbf16>, vector<16x128xf32> -> vector<16x128xf32>
    %5 = vector.broadcast %3 : vector<1x128xf32> to vector<16x128xf32>
    %6 = arith.addf %4, %5 : vector<16x128xf32>
    %cst_5 = arith.constant 0.000000e+00 : f32
    %7 = vector.broadcast %cst_5 : f32 to vector<16x128xf32>
    %8 = arith.maximumf %6, %7 : vector<16x128xf32>
    %9 = arith.truncf %8 : vector<16x128xf32> to vector<16x128xbf16>
    %c0_6 = arith.constant 0 : index
    %c0_7 = arith.constant 0 : index
    %10 = vector.load %arg4[%c0_6, %c0_7] : memref<128x128xbf16, #tpu.memory_space<vmem>>, vector<128x128xbf16>
    %c0_8 = arith.constant 0 : index
    %c0_9 = arith.constant 0 : index
    %11 = vector.load %arg5[%c0_8, %c0_9] : memref<1x128xf32, #tpu.memory_space<vmem>>, vector<1x128xf32>
    %cst_10 = arith.constant dense<0.000000e+00> : vector<16x128xf32>
    %12 = tpu.matmul %9, %10, %cst_10 {dimension_numbers = #tpu.dot_dimension_numbers<[1], [0], [0], [1], [0, 0, 1, 1], [], []>} : vector<16x128xbf16>, vector<128x128xbf16>, vector<16x128xf32> -> vector<16x128xf32>
    %13 = vector.broadcast %11 : vector<1x128xf32> to vector<16x128xf32>
    %14 = arith.addf %12, %13 : vector<16x128xf32>
    %cst_11 = arith.constant 0.000000e+00 : f32
    %15 = vector.broadcast %cst_11 : f32 to vector<16x128xf32>
    %16 = arith.maximumf %14, %15 : vector<16x128xf32>
    %17 = arith.truncf %16 : vector<16x128xf32> to vector<16x128xbf16>
    %c0_12 = arith.constant 0 : index
    %c0_13 = arith.constant 0 : index
    %18 = vector.load %arg6[%c0_12, %c0_13] : memref<128x128xbf16, #tpu.memory_space<vmem>>, vector<128x128xbf16>
    %c0_14 = arith.constant 0 : index
    %c0_15 = arith.constant 0 : index
    %19 = vector.load %arg7[%c0_14, %c0_15] : memref<1x128xf32, #tpu.memory_space<vmem>>, vector<1x128xf32>
    %cst_16 = arith.constant dense<0.000000e+00> : vector<16x128xf32>
    %20 = tpu.matmul %17, %18, %cst_16 {dimension_numbers = #tpu.dot_dimension_numbers<[1], [0], [0], [1], [0, 0, 1, 1], [], []>} : vector<16x128xbf16>, vector<128x128xbf16>, vector<16x128xf32> -> vector<16x128xf32>
    %21 = vector.broadcast %19 : vector<1x128xf32> to vector<16x128xf32>
    %22 = arith.addf %20, %21 : vector<16x128xf32>
    %cst_17 = arith.constant dense<0xFF800000> : vector<16xf32>
    %23 = vector.multi_reduction <maximumf>, %22, %cst_17 [1] : vector<16x128xf32> to vector<16xf32>
    %24 = vector.shape_cast %23 : vector<16xf32> to vector<16x1xf32>
    %25 = vector.broadcast %24 : vector<16x1xf32> to vector<16x128xf32>
    %26 = arith.subf %22, %25 : vector<16x128xf32>
    %27 = math.exp %26 : vector<16x128xf32>
    %cst_18 = arith.constant dense<0.000000e+00> : vector<16xf32>
    %28 = vector.multi_reduction <add>, %27, %cst_18 [1] : vector<16x128xf32> to vector<16xf32>
    %29 = vector.shape_cast %28 : vector<16xf32> to vector<16x1xf32>
    %30 = math.log %29 : vector<16x1xf32>
    %31 = vector.broadcast %30 : vector<16x1xf32> to vector<16x128xf32>
    %32 = arith.subf %26, %31 : vector<16x128xf32>
    %33 = arith.truncf %32 : vector<16x128xf32> to vector<16x128xbf16>
    %c0_19 = arith.constant 0 : index
    %c0_20 = arith.constant 0 : index
    %34 = vector.load %arg8[%c0_19, %c0_20] : memref<16x128xbf16, #tpu.memory_space<vmem>>, vector<16x128xbf16>
    tpu.vector_store %arg8[%c0_19, %c0_20], %33 {strides = array<i32>} : memref<16x128xbf16, #tpu.memory_space<vmem>>, vector<16x128xbf16>,
    return
  }
  func.func @transform_0(%arg0: i32) -> (i32, i32) {
    %c0_i32 = arith.constant 0 : i32
    %c0_i32_0 = arith.constant 0 : i32
    return %arg0, %c0_i32 : i32, i32
  }
  func.func @transform_1(%arg0: i32) -> (i32, i32) {
    %c0_i32 = arith.constant 0 : i32
    %c0_i32_0 = arith.constant 0 : i32
    %c0_i32_1 = arith.constant 0 : i32
    return %c0_i32, %c0_i32_0 : i32, i32
  }
  func.func @transform_2(%arg0: i32) -> (i32, i32) {
    %c0_i32 = arith.constant 0 : i32
    %c0_i32_0 = arith.constant 0 : i32
    %c0_i32_1 = arith.constant 0 : i32
    return %c0_i32, %c0_i32_0 : i32, i32
  }
  func.func @transform_3(%arg0: i32) -> (i32, i32) {
    %c0_i32 = arith.constant 0 : i32
    %c0_i32_0 = arith.constant 0 : i32
    %c0_i32_1 = arith.constant 0 : i32
    return %c0_i32, %c0_i32_0 : i32, i32
  }
  func.func @transform_4(%arg0: i32) -> (i32, i32) {
    %c0_i32 = arith.constant 0 : i32
    %c0_i32_0 = arith.constant 0 : i32
    %c0_i32_1 = arith.constant 0 : i32
    return %c0_i32, %c0_i32_0 : i32, i32
  }
  func.func @transform_5(%arg0: i32) -> (i32, i32) {
    %c0_i32 = arith.constant 0 : i32
    %c0_i32_0 = arith.constant 0 : i32
    %c0_i32_1 = arith.constant 0 : i32
    return %c0_i32, %c0_i32_0 : i32, i32
  }
  func.func @transform_6(%arg0: i32) -> (i32, i32) {
    %c0_i32 = arith.constant 0 : i32
    %c0_i32_0 = arith.constant 0 : i32
    %c0_i32_1 = arith.constant 0 : i32
    return %c0_i32, %c0_i32_0 : i32, i32
  }
  func.func @transform_7(%arg0: i32) -> (i32, i32) {
    %c0_i32 = arith.constant 0 : i32
    %c0_i32_0 = arith.constant 0 : i32
    return %arg0, %c0_i32 : i32, i32
  }
}

module attributes {stable_mosaic.version = 11 : i64} {
  func.func @kernel(%arg0: i32, %arg1: memref<16x16xf32, #tpu.memory_space<vmem>>, %arg2: memref<16x128xbf16, #tpu.memory_space<vmem>>, %arg3: memref<1x128xf32, #tpu.memory_space<vmem>>, %arg4: memref<128x128xbf16, #tpu.memory_space<vmem>>, %arg5: memref<1x128xf32, #tpu.memory_space<vmem>>, %arg6: memref<128x128xbf16, #tpu.memory_space<vmem>>, %arg7: memref<1x128xf32, #tpu.memory_space<vmem>>, %arg8: memref<16x128xbf16, #tpu.memory_space<vmem>>) attributes {dimension_semantics = [#tpu.dimension_semantics<parallel>], iteration_bounds = array<i64: 1>, scalar_prefetch = 0 : i64, scratch_operands = 0 : i64, tpu.core_type = #tpu.core_type<tc>, window_params = [{transform_indices = @transform_0, window_bounds = array<i64: 16, 16>}, {pipeline_mode = #tpu.pipeline_mode<synchronous>, transform_indices = @transform_1, window_bounds = array<i64: 16, 128>}, {pipeline_mode = #tpu.pipeline_mode<synchronous>, transform_indices = @transform_2, window_bounds = array<i64: 1, 128>}, {pipeline_mode = #tpu.pipeline_mode<synchronous>, transform_indices = @transform_3, window_bounds = array<i64: 128, 128>}, {pipeline_mode = #tpu.pipeline_mode<synchronous>, transform_indices = @transform_4, window_bounds = array<i64: 1, 128>}, {pipeline_mode = #tpu.pipeline_mode<synchronous>, transform_indices = @transform_5, window_bounds = array<i64: 128, 128>}, {pipeline_mode = #tpu.pipeline_mode<synchronous>, transform_indices = @transform_6, window_bounds = array<i64: 1, 128>}, {transform_indices = @transform_7, window_bounds = array<i64: 16, 128>}]} {
    %c0 = arith.constant 0 : index
    %c0_0 = arith.constant 0 : index
    %0 = vector.load %arg1[%c0, %c0_0] : memref<16x16xf32, #tpu.memory_space<vmem>>, vector<16x16xf32>
    %1 = arith.truncf %0 : vector<16x16xf32> to vector<16x16xbf16>
    %c0_1 = arith.constant 0 : index
    %c0_2 = arith.constant 0 : index
    %2 = vector.load %arg2[%c0_1, %c0_2] : memref<16x128xbf16, #tpu.memory_space<vmem>>, vector<16x128xbf16>
    %c0_3 = arith.constant 0 : index
    %c0_4 = arith.constant 0 : index
    %3 = vector.load %arg3[%c0_3, %c0_4] : memref<1x128xf32, #tpu.memory_space<vmem>>, vector<1x128xf32>
    %cst = arith.constant dense<0.000000e+00> : vector<16x128xf32>
    %4 = tpu.matmul %1, %2, %cst {dimension_numbers = #tpu.dot_dimension_numbers<[1], [0], [0], [1], [0, 0, 1, 1], [], []>} : vector<16x16xbf16>, vector<16x128xbf16>, vector<16x128xf32> -> vector<16x128xf32>
    %5 = vector.broadcast %3 : vector<1x128xf32> to vector<16x128xf32>
    %6 = arith.addf %4, %5 : vector<16x128xf32>
    %cst_5 = arith.constant 0.000000e+00 : f32
    %7 = vector.broadcast %cst_5 : f32 to vector<16x128xf32>
    %8 = arith.maximumf %6, %7 : vector<16x128xf32>
    %9 = arith.truncf %8 : vector<16x128xf32> to vector<16x128xbf16>
    %c0_6 = arith.constant 0 : index
    %c0_7 = arith.constant 0 : index
    %10 = vector.load %arg4[%c0_6, %c0_7] : memref<128x128xbf16, #tpu.memory_space<vmem>>, vector<128x128xbf16>
    %c0_8 = arith.constant 0 : index
    %c0_9 = arith.constant 0 : index
    %11 = vector.load %arg5[%c0_8, %c0_9] : memref<1x128xf32, #tpu.memory_space<vmem>>, vector<1x128xf32>
    %cst_10 = arith.constant dense<0.000000e+00> : vector<16x128xf32>
    %12 = tpu.matmul %9, %10, %cst_10 {dimension_numbers = #tpu.dot_dimension_numbers<[1], [0], [0], [1], [0, 0, 1, 1], [], []>} : vector<16x128xbf16>, vector<128x128xbf16>, vector<16x128xf32> -> vector<16x128xf32>
    %13 = vector.broadcast %11 : vector<1x128xf32> to vector<16x128xf32>
    %14 = arith.addf %12, %13 : vector<16x128xf32>
    %cst_11 = arith.constant 0.000000e+00 : f32
    %15 = vector.broadcast %cst_11 : f32 to vector<16x128xf32>
    %16 = arith.maximumf %14, %15 : vector<16x128xf32>
    %17 = arith.truncf %16 : vector<16x128xf32> to vector<16x128xbf16>
    %c0_12 = arith.constant 0 : index
    %c0_13 = arith.constant 0 : index
    %18 = vector.load %arg6[%c0_12, %c0_13] : memref<128x128xbf16, #tpu.memory_space<vmem>>, vector<128x128xbf16>
    %c0_14 = arith.constant 0 : index
    %c0_15 = arith.constant 0 : index
    %19 = vector.load %arg7[%c0_14, %c0_15] : memref<1x128xf32, #tpu.memory_space<vmem>>, vector<1x128xf32>
    %cst_16 = arith.constant dense<0.000000e+00> : vector<16x128xf32>
    %20 = tpu.matmul %17, %18, %cst_16 {dimension_numbers = #tpu.dot_dimension_numbers<[1], [0], [0], [1], [0, 0, 1, 1], [], []>} : vector<16x128xbf16>, vector<128x128xbf16>, vector<16x128xf32> -> vector<16x128xf32>
    %21 = vector.broadcast %19 : vector<1x128xf32> to vector<16x128xf32>
    %22 = arith.addf %20, %21 : vector<16x128xf32>
    %cst_17 = arith.constant dense<0xFF800000> : vector<16xf32>
    %23 = vector.multi_reduction <maximumf>, %22, %cst_17 [1] : vector<16x128xf32> to vector<16xf32>
    %24 = vector.shape_cast %23 : vector<16xf32> to vector<16x1xf32>
    %25 = vector.broadcast %24 : vector<16x1xf32> to vector<16x128xf32>
    %26 = arith.subf %22, %25 : vector<16x128xf32>
    %27 = math.exp %26 : vector<16x128xf32>
    %cst_18 = arith.constant dense<0.000000e+00> : vector<16xf32>
    %28 = vector.multi_reduction <add>, %27, %cst_18 [1] : vector<16x128xf32> to vector<16xf32>
    %29 = vector.shape_cast %28 : vector<16xf32> to vector<16x1xf32>
    %30 = math.log %29 : vector<16x1xf32>
    %31 = vector.broadcast %30 : vector<16x1xf32> to vector<16x128xf32>
    %32 = arith.subf %26, %31 : vector<16x128xf32>
    %33 = arith.truncf %32 : vector<16x128xf32> to vector<16x128xbf16>
    %c0_19 = arith.constant 0 : index
    %c0_20 = arith.constant 0 : index
    %34 = vector.load %arg8[%c0_19, %c0_20] : memref<16x128xbf16, #tpu.memory_space<vmem>>, vector<16x128xbf16>
    tpu.vector_store %arg8[%c0_19, %c0_20], %33 {strides = array<i32>} : memref<16x128xbf16, #tpu.memory_space<vmem>>, vector<16x128xbf16>,
    return
  }
  func.func @transform_0(%arg0: i32) -> (i32, i32) {
    %c0_i32 = arith.constant 0 : i32
    %c0_i32_0 = arith.constant 0 : i32
    return %arg0, %c0_i32 : i32, i32
  }
  func.func @transform_1(%arg0: i32) -> (i32, i32) {
    %c0_i32 = arith.constant 0 : i32
    %c0_i32_0 = arith.constant 0 : i32
    %c0_i32_1 = arith.constant 0 : i32
    return %c0_i32, %c0_i32_0 : i32, i32
  }
  func.func @transform_2(%arg0: i32) -> (i32, i32) {
    %c0_i32 = arith.constant 0 : i32
    %c0_i32_0 = arith.constant 0 : i32
    %c0_i32_1 = arith.constant 0 : i32
    return %c0_i32, %c0_i32_0 : i32, i32
  }
  func.func @transform_3(%arg0: i32) -> (i32, i32) {
    %c0_i32 = arith.constant 0 : i32
    %c0_i32_0 = arith.constant 0 : i32
    %c0_i32_1 = arith.constant 0 : i32
    return %c0_i32, %c0_i32_0 : i32, i32
  }
  func.func @transform_4(%arg0: i32) -> (i32, i32) {
    %c0_i32 = arith.constant 0 : i32
    %c0_i32_0 = arith.constant 0 : i32
    %c0_i32_1 = arith.constant 0 : i32
    return %c0_i32, %c0_i32_0 : i32, i32
  }
  func.func @transform_5(%arg0: i32) -> (i32, i32) {
    %c0_i32 = arith.constant 0 : i32
    %c0_i32_0 = arith.constant 0 : i32
    %c0_i32_1 = arith.constant 0 : i32
    return %c0_i32, %c0_i32_0 : i32, i32
  }
  func.func @transform_6(%arg0: i32) -> (i32, i32) {
    %c0_i32 = arith.constant 0 : i32
    %c0_i32_0 = arith.constant 0 : i32
    %c0_i32_1 = arith.constant 0 : i32
    return %c0_i32, %c0_i32_0 : i32, i32
  }
  func.func @transform_7(%arg0: i32) -> (i32, i32) {
    %c0_i32 = arith.constant 0 : i32
    %c0_i32_0 = arith.constant 0 : i32
    return %arg0, %c0_i32 : i32, i32
  }
}

</mosaic_0001>

<bundles_post_ra>
// kernel: mlp_apply.1
= control target key start
LH: loop header
LB: loop body
LE: loop exit
PB: predicated region body
PF: predicated region fallthrough
CT: control target
= control target key end

     0   :  { %12 = vsyncpa [#allocation3], 0  ;;  %s651_s0 = inlined_call_operand.vmem [shape: f32[16,16], index: 0, kind: input, shape index: {}]   ;;  %s652_s1 = inlined_call_operand.vmem [shape: bf16[16,128], index: 1, kind: input, shape index: {}]   ;;  %s653_s2 = inlined_call_operand.vmem [shape: f32[1,128], index: 2, kind: input, shape index: {}]   ;;  %s654_s3 = inlined_call_operand.hbm [shape: bf16[128,128], index: 3, kind: input, shape index: {}]   ;;  %s655_s4 = inlined_call_operand.vmem [shape: f32[1,128], index: 4, kind: input, shape index: {}]   ;;  %s656_s5 = inlined_call_operand.hbm [shape: bf16[128,128], index: 5, kind: input, shape index: {}]   ;;  %s657_s6 = inlined_call_operand.vmem [shape: f32[1,128], index: 6, kind: input, shape index: {}]   ;;  %s658_s7 = inlined_call_operand.vmem [shape: bf16[16,128], index: 7, kind: output, shape index: {}]  }
   0x1   :  { %13 = vsyncpa [#allocation5], 0  ;;  %s555_s24 = smov [#allocation2]  }
   0x2   :  { %s25_s25 = sshll.u32 %s555_s24, 4  ;;  %s26_s25 = int_to_ptr.vmem [resolvable:$true] %s25_s25 }
   0x3   :  { %s519_s26 = scalar_lea.vmem %s26_s25, 1024  ;;  %p524_p1 = scmp.lt.s32.totalorder %s26_s25, %s26_s25 }
   0x4   :  { %p520_p0 = scmp.ne.s32.totalorder %s26_s25, %s519_s26  ;;  %p525_p2 = scmp.lt.s32.totalorder %s519_s26, %s519_s26 }
   0x6   :  { %p526_p3 = por %p525_p2, %p524_p1 }
   0x8   :  { %p527_p4 = pnand %p526_p3, %p520_p0 }
   0xa   :  { %530 = shalt.err (!%p527_p4)
}
   0xb   :  { %s556_s27 = smov 64   ;;  %s557_s28 = smov 4  }
   0xc   :  { %31 = dma.hbm_to_vmem [thread:$0]  %s654_s3, 1024, %s26_s25, [#allocation3], %s556_s27, %s556_s27, %s557_s28  }
   0xd   :  { %s558_s8 = smov [#allocation4]  }
   0xe   :  { %s39_s9 = sshll.u32 %s558_s8, 4  ;;  %s40_s9 = int_to_ptr.vmem [resolvable:$true] %s39_s9 }
   0xf   :  { %s539_s10 = scalar_lea.vmem %s40_s9, 1024  ;;  %p544_p6 = scmp.lt.s32.totalorder %s40_s9, %s40_s9 }
  0x10   :  { %p540_p5 = scmp.ne.s32.totalorder %s40_s9, %s539_s10  ;;  %p545_p7 = scmp.lt.s32.totalorder %s539_s10, %s539_s10 }
  0x12   :  { %p546_p8 = por %p545_p7, %p544_p6 }
  0x14   :  { %p547_p9 = pnand %p546_p8, %p540_p5 }
  0x16   :  { %550 = shalt.err (!%p547_p9)
}
  0x17   :  { %45 = dma.hbm_to_vmem [thread:$0]  %s656_s5, 1024, %s40_s9, [#allocation5], %s556_s27, %s556_s27, %s557_s28  }
  0x18   :  { %551 = dma.done.wait [#allocation3], 1024  }
  0x19   :  { %552 = vsyncadd [#allocation3], 4294966272 }
  0x1a   :  { %553 = dma.done.wait [#allocation5], 1024  }
  0x1b   :  { %554 = vsyncadd [#allocation5], 4294966272  ;;  %v559_v0 = vmov 0.0   ;;  %vm560_vm0 = vmmov 0   ;;  %v486_v1 = vld [vmem:[%s652_s1] sm:$0xff]   ;;  %v56_v3 = vld [vmem:[%s651_s0 + $0x8] sm:$0xff] }
  0x1c   :  { %434 = vmatprep.subr.bf16.mxu0 %v559_v0  ;;  %436 = vmatprep.mubr.msk.bf16.mxu0 %vm560_vm0, %v559_v0  ;;  %v55_v2 = vld [vmem:[%s651_s0] sm:$0xff]  ;;  %vm73_vm1 = vcmask 130048   ;;  %v487_v5 = vld [vmem:[#allocation2 + $0x38] sm:$0xff]   ;;  %v488_v6 = vld [vmem:[#allocation2 + $0x30] sm:$0xff]  }
  0x1d   :  { %440 = vmatprep.subr.bf16.mxu1 %v559_v0  ;;  %456 = vmatprep.mubr.msk.bf16.mxu1 %vm560_vm0, %v559_v0  ;;  %v57_v4 = vpack.c.bf16 %v56_v3, %v55_v2  ;;  %v489_v7 = vld [vmem:[#allocation2 + $0x28] sm:$0xff]   ;;  %v490_v8 = vld [vmem:[#allocation2 + $0x20] sm:$0xff]   ;;  %v491_v9 = vld [vmem:[#allocation2 + $0x18] sm:$0xff]  }
  0x1e   :  { %435 = vmatpush3.bf16.msra.mxu0 %v486_v1  ;;  %441 = vmatpush3.bf16.msra.mxu1 %v487_v5  ;;  %v492_v10 = vld [vmem:[#allocation2 + $0x10] sm:$0xff]   ;;  %v493_v11 = vld [vmem:[#allocation2 + $0x8] sm:$0xff]   ;;  %v494_v12 = vld [vmem:[#allocation2] sm:$0xff]  }
  0x1f   :  { %460 = vmatprep.subr.bf16.mxu0 %v559_v0  ;;  %442 = vmatprep.subr.bf16.mxu1 %v559_v0  ;;  %v495_v13 = vld [vmem:[#allocation4 + $0x38] sm:$0xff]   ;;  %v496_v14 = vld [vmem:[#allocation4 + $0x30] sm:$0xff]   ;;  %v497_v15 = vld [vmem:[#allocation4 + $0x28] sm:$0xff]  }
  0x20   :  { %v498_v16 = vld [vmem:[#allocation4 + $0x20] sm:$0xff]   ;;  %v499_v17 = vld [vmem:[#allocation4 + $0x18] sm:$0xff]   ;;  %v500_v28 = vld [vmem:[#allocation4 + $0x10] sm:$0xff]  }
  0x21   :  { %437 = vmatmul.mubr.msk.bf16.vlgmr.msra.gmra.mxu0 %vm73_vm1, %v57_v4  ;;  %v384_v18 = vld [vmem:[%s653_s2] ss:$0 sm:$0xff]  ;;  %v501_v29 = vld [vmem:[#allocation4 + $0x8] sm:$0xff]  }
  0x22   :  { %476 = vmatprep.mubr.msk.bf16.mxu0 %vm560_vm0, %v559_v0  ;;  %443 = vmatpush3.bf16.msra.mxu1 %v488_v6  ;;  %v502_v30 = vld [vmem:[#allocation4] sm:$0xff]  }
  0x23   :  { %444 = vmatprep.subr.bf16.mxu1 %v559_v0  ;;  %461 = vmatpush3.bf16.msra.mxu0 %v495_v13  ;;  %v387_v31 = vld [vmem:[%s655_s4] ss:$0 sm:$0xff] }
  0x24   :  { %462 = vmatprep.subr.bf16.mxu0 %v559_v0  ;;  %v396_v41 = vld [vmem:[%s657_s6] ss:$0 sm:$0xff] }
  0x26   :  { %445 = vmatpush3.bf16.msra.mxu1 %v489_v7 }
  0x27   :  { %446 = vmatprep.subr.bf16.mxu1 %v559_v0  ;;  %463 = vmatpush3.bf16.msra.mxu0 %v496_v14 }
  0x28   :  { %464 = vmatprep.subr.bf16.mxu0 %v559_v0 }
  0x2a   :  { %447 = vmatpush3.bf16.msra.mxu1 %v490_v8 }
  0x2b   :  { %448 = vmatprep.subr.bf16.mxu1 %v559_v0  ;;  %465 = vmatpush3.bf16.msra.mxu0 %v497_v15 }
  0x2c   :  { %466 = vmatprep.subr.bf16.mxu0 %v559_v0 }
  0x2e   :  { %449 = vmatpush3.bf16.msra.mxu1 %v491_v9 }
  0x2f   :  { %450 = vmatprep.subr.bf16.mxu1 %v559_v0  ;;  %467 = vmatpush3.bf16.msra.mxu0 %v498_v16 }
  0x30   :  { %468 = vmatprep.subr.bf16.mxu0 %v559_v0 }
  0x32   :  { %451 = vmatpush3.bf16.msra.mxu1 %v492_v10 }
  0x33   :  { %452 = vmatprep.subr.bf16.mxu1 %v559_v0  ;;  %469 = vmatpush3.bf16.msra.mxu0 %v499_v17 }
  0x34   :  { %470 = vmatprep.subr.bf16.mxu0 %v559_v0 }
  0x36   :  { %453 = vmatpush3.bf16.msra.mxu1 %v493_v11 }
  0x37   :  { %454 = vmatprep.subr.bf16.mxu1 %v559_v0  ;;  %471 = vmatpush3.bf16.msra.mxu0 %v500_v28 }
  0x38   :  { %472 = vmatprep.subr.bf16.mxu0 %v559_v0 }
  0x3a   :  { %455 = vmatpush3.bf16.msra.mxu1 %v494_v12 }
  0x3b   :  { %473 = vmatpush3.bf16.msra.mxu0 %v501_v29 }
  0x3c   :  { %474 = vmatprep.subr.bf16.mxu0 %v559_v0 }
  0x3f   :  { %475 = vmatpush3.bf16.msra.mxu0 %v502_v30 }
  0xe1   :  { %v111_v19 = vpop.f32.mrf.mxu0 }
  0xe2   :  { %v112_v21 = vadd.f32 %v384_v18, %v111_v19 }
  0xe3   :  { %v438_v20 = vpop.f32.mrf.mxu0 }
  0xe4   :  { %v118_v25 = vmax.f32 %v112_v21, 0.0 }
  0xe5   :  { %v114_v22 = vpop.f32.mrf.mxu0 }
  0xe6   :  { %v115_v23 = vadd.f32 %v384_v18, %v114_v22 }
  0xe7   :  { %v439_v24 = vpop.f32.mrf.mxu0 }
  0xe8   :  { %v119_v26 = vmax.f32 %v115_v23, 0.0 }
  0xea   :  { %v120_v27 = vpack.c.bf16 %v119_v26, %v118_v25 }
  0xec   :  { %457 = vmatmul.mubr.bf16.vlgmr.msra.gmra.mxu1 %v120_v27 }
 0x1ac   :  { %v226_v32 = vpop.f32.mrf.mxu1 }
 0x1ad   :  { %v227_v34 = vadd.f32 %v387_v31, %v226_v32 }
 0x1ae   :  { %v458_v33 = vpop.f32.mrf.mxu1 }
 0x1af   :  { %v233_v38 = vmax.f32 %v227_v34, 0.0 }
 0x1b0   :  { %v229_v35 = vpop.f32.mrf.mxu1 }
 0x1b1   :  { %v230_v36 = vadd.f32 %v387_v31, %v229_v35 }
 0x1b2   :  { %v459_v37 = vpop.f32.mrf.mxu1 }
 0x1b3   :  { %v234_v39 = vmax.f32 %v230_v36, 0.0 }
 0x1b5   :  { %v235_v40 = vpack.c.bf16 %v234_v39, %v233_v38 }
 0x1b7   :  { %477 = vmatmul.mubr.bf16.vlgmr.msra.gmra.mxu0 %v235_v40 }
 0x277   :  { %v341_v42 = vpop.f32.mrf.mxu0 }
 0x278   :  { %v342_v43 = vadd.f32 %v396_v41, %v341_v42 }
 0x279   :  { %v478_v44 = vpop.f32.mrf.mxu0 }
 0x27a   :  { %348 = vmax.xlane.f32.xlu0 %v342_v43 }
 0x27b   :  { %v344_v45 = vpop.f32.mrf.mxu0 }
 0x27c   :  { %v345_v46 = vadd.f32 %v396_v41, %v344_v45 }
 0x27d   :  { %v479_v47 = vpop.f32.mrf.mxu0 }
 0x27e   :  { %350 = vmax.xlane.f32.xlu0 %v345_v46 }
 0x303   :  { %v349_v48 = vpop.xlane.xlu0 %348 }
 0x304   :  { %v352_v49 = vsub.f32 %v342_v43, %v349_v48 }
 0x306   :  { %v354_v50 = vmul.f32 1.442695, %v352_v49 }
 0x307   :  { %v351_v51 = vpop.xlane.xlu0 %350 }
 0x308   :  { %v353_v52 = vsub.f32 %v345_v46, %v351_v51  ;;  %503 = vpow2.f32 %v354_v50 }
 0x30a   :  { %v356_v53 = vmul.f32 1.442695, %v353_v52 }
 0x30c   :  { %505 = vpow2.f32 %v356_v53 }
 0x315   :  { %v504_v54 = vpop.eup %503 }
 0x316   :  { %358 = vadd.xlane.f32.xlu1 %v504_v54 }
 0x319   :  { %v506_v55 = vpop.eup %505 }
 0x31a   :  { %360 = vadd.xlane.f32.xlu1 %v506_v55 }
 0x39f   :  { %v359_v56 = vpop.xlane.xlu1 %358 }
 0x3a0   :  { %507 = vlog2.f32 %v359_v56 }
 0x3a3   :  { %v361_v57 = vpop.xlane.xlu1 %360 }
 0x3a4   :  { %509 = vlog2.f32 %v361_v57 }
 0x3ad   :  { %v508_v58 = vpop.eup %507 }
 0x3ae   :  { %v363_v59 = vmul.f32 0.6931472, %v508_v58 }
 0x3b0   :  { %v366_v62 = vsub.f32 %v352_v49, %v363_v59 }
 0x3b1   :  { %v510_v60 = vpop.eup %509 }
 0x3b2   :  { %v365_v61 = vmul.f32 0.6931472, %v510_v60 }
 0x3b4   :  { %v367_v63 = vsub.f32 %v353_v52, %v365_v61 }
 0x3b6   :  { %v412_v0 = vpack.c.bf16 %v367_v63, %v366_v62 }
 0x3b8   :  { %413 = vst [vmem:[%s658_s7] sm:$0xff] %v412_v0  }
 0x3b9   :  { %382 = vsyncpa [#allocation3], 1 }
 0x3ba   :  { %383 = vsyncpa [#allocation5], 1 }

// kernel: mlp_apply.1
= control target key start
LH: loop header
LB: loop body
LE: loop exit
PB: predicated region body
PF: predicated region fallthrough
CT: control target
= control target key end

     0   :  { %12 = vsyncpa [#allocation3], 0  ;;  %s651_s0 = inlined_call_operand.vmem [shape: f32[16,16], index: 0, kind: input, shape index: {}]   ;;  %s652_s1 = inlined_call_operand.vmem [shape: bf16[16,128], index: 1, kind: input, shape index: {}]   ;;  %s653_s2 = inlined_call_operand.vmem [shape: f32[1,128], index: 2, kind: input, shape index: {}]   ;;  %s654_s3 = inlined_call_operand.hbm [shape: bf16[128,128], index: 3, kind: input, shape index: {}]   ;;  %s655_s4 = inlined_call_operand.vmem [shape: f32[1,128], index: 4, kind: input, shape index: {}]   ;;  %s656_s5 = inlined_call_operand.hbm [shape: bf16[128,128], index: 5, kind: input, shape index: {}]   ;;  %s657_s6 = inlined_call_operand.vmem [shape: f32[1,128], index: 6, kind: input, shape index: {}]   ;;  %s658_s7 = inlined_call_operand.vmem [shape: bf16[16,128], index: 7, kind: output, shape index: {}]  }
   0x1   :  { %13 = vsyncpa [#allocation5], 0  ;;  %s555_s24 = smov [#allocation2]  }
   0x2   :  { %s25_s25 = sshll.u32 %s555_s24, 4  ;;  %s26_s25 = int_to_ptr.vmem [resolvable:$true] %s25_s25 }
   0x3   :  { %s519_s26 = scalar_lea.vmem %s26_s25, 1024  ;;  %p524_p1 = scmp.lt.s32.totalorder %s26_s25, %s26_s25 }
   0x4   :  { %p520_p0 = scmp.ne.s32.totalorder %s26_s25, %s519_s26  ;;  %p525_p2 = scmp.lt.s32.totalorder %s519_s26, %s519_s26 }
   0x6   :  { %p526_p3 = por %p525_p2, %p524_p1 }
   0x8   :  { %p527_p4 = pnand %p526_p3, %p520_p0 }
   0xa   :  { %530 = shalt.err (!%p527_p4)
}
   0xb   :  { %s556_s27 = smov 64   ;;  %s557_s28 = smov 4  }
   0xc   :  { %31 = dma.hbm_to_vmem [thread:$0]  %s654_s3, 1024, %s26_s25, [#allocation3], %s556_s27, %s556_s27, %s557_s28  }
   0xd   :  { %s558_s8 = smov [#allocation4]  }
   0xe   :  { %s39_s9 = sshll.u32 %s558_s8, 4  ;;  %s40_s9 = int_to_ptr.vmem [resolvable:$true] %s39_s9 }
   0xf   :  { %s539_s10 = scalar_lea.vmem %s40_s9, 1024  ;;  %p544_p6 = scmp.lt.s32.totalorder %s40_s9, %s40_s9 }
  0x10   :  { %p540_p5 = scmp.ne.s32.totalorder %s40_s9, %s539_s10  ;;  %p545_p7 = scmp.lt.s32.totalorder %s539_s10, %s539_s10 }
  0x12   :  { %p546_p8 = por %p545_p7, %p544_p6 }
  0x14   :  { %p547_p9 = pnand %p546_p8, %p540_p5 }
  0x16   :  { %550 = shalt.err (!%p547_p9)
}
  0x17   :  { %45 = dma.hbm_to_vmem [thread:$0]  %s656_s5, 1024, %s40_s9, [#allocation5], %s556_s27, %s556_s27, %s557_s28  }
  0x18   :  { %551 = dma.done.wait [#allocation3], 1024  }
  0x19   :  { %552 = vsyncadd [#allocation3], 4294966272 }
  0x1a   :  { %553 = dma.done.wait [#allocation5], 1024  }
  0x1b   :  { %554 = vsyncadd [#allocation5], 4294966272  ;;  %v559_v0 = vmov 0.0   ;;  %vm560_vm0 = vmmov 0   ;;  %v486_v1 = vld [vmem:[%s652_s1] sm:$0xff]   ;;  %v56_v3 = vld [vmem:[%s651_s0 + $0x8] sm:$0xff] }
  0x1c   :  { %434 = vmatprep.subr.bf16.mxu0 %v559_v0  ;;  %436 = vmatprep.mubr.msk.bf16.mxu0 %vm560_vm0, %v559_v0  ;;  %v55_v2 = vld [vmem:[%s651_s0] sm:$0xff]  ;;  %vm73_vm1 = vcmask 130048   ;;  %v487_v5 = vld [vmem:[#allocation2 + $0x38] sm:$0xff]   ;;  %v488_v6 = vld [vmem:[#allocation2 + $0x30] sm:$0xff]  }
  0x1d   :  { %440 = vmatprep.subr.bf16.mxu1 %v559_v0  ;;  %456 = vmatprep.mubr.msk.bf16.mxu1 %vm560_vm0, %v559_v0  ;;  %v57_v4 = vpack.c.bf16 %v56_v3, %v55_v2  ;;  %v489_v7 = vld [vmem:[#allocation2 + $0x28] sm:$0xff]   ;;  %v490_v8 = vld [vmem:[#allocation2 + $0x20] sm:$0xff]   ;;  %v491_v9 = vld [vmem:[#allocation2 + $0x18] sm:$0xff]  }
  0x1e   :  { %435 = vmatpush3.bf16.msra.mxu0 %v486_v1  ;;  %441 = vmatpush3.bf16.msra.mxu1 %v487_v5  ;;  %v492_v10 = vld [vmem:[#allocation2 + $0x10] sm:$0xff]   ;;  %v493_v11 = vld [vmem:[#allocation2 + $0x8] sm:$0xff]   ;;  %v494_v12 = vld [vmem:[#allocation2] sm:$0xff]  }
  0x1f   :  { %460 = vmatprep.subr.bf16.mxu0 %v559_v0  ;;  %442 = vmatprep.subr.bf16.mxu1 %v559_v0  ;;  %v495_v13 = vld [vmem:[#allocation4 + $0x38] sm:$0xff]   ;;  %v496_v14 = vld [vmem:[#allocation4 + $0x30] sm:$0xff]   ;;  %v497_v15 = vld [vmem:[#allocation4 + $0x28] sm:$0xff]  }
  0x20   :  { %v498_v16 = vld [vmem:[#allocation4 + $0x20] sm:$0xff]   ;;  %v499_v17 = vld [vmem:[#allocation4 + $0x18] sm:$0xff]   ;;  %v500_v28 = vld [vmem:[#allocation4 + $0x10] sm:$0xff]  }
  0x21   :  { %437 = vmatmul.mubr.msk.bf16.vlgmr.msra.gmra.mxu0 %vm73_vm1, %v57_v4  ;;  %v384_v18 = vld [vmem:[%s653_s2] ss:$0 sm:$0xff]  ;;  %v501_v29 = vld [vmem:[#allocation4 + $0x8] sm:$0xff]  }
  0x22   :  { %476 = vmatprep.mubr.msk.bf16.mxu0 %vm560_vm0, %v559_v0  ;;  %443 = vmatpush3.bf16.msra.mxu1 %v488_v6  ;;  %v502_v30 = vld [vmem:[#allocation4] sm:$0xff]  }
  0x23   :  { %444 = vmatprep.subr.bf16.mxu1 %v559_v0  ;;  %461 = vmatpush3.bf16.msra.mxu0 %v495_v13  ;;  %v387_v31 = vld [vmem:[%s655_s4] ss:$0 sm:$0xff] }
  0x24   :  { %462 = vmatprep.subr.bf16.mxu0 %v559_v0  ;;  %v396_v41 = vld [vmem:[%s657_s6] ss:$0 sm:$0xff] }
  0x26   :  { %445 = vmatpush3.bf16.msra.mxu1 %v489_v7 }
  0x27   :  { %446 = vmatprep.subr.bf16.mxu1 %v559_v0  ;;  %463 = vmatpush3.bf16.msra.mxu0 %v496_v14 }
  0x28   :  { %464 = vmatprep.subr.bf16.mxu0 %v559_v0 }
  0x2a   :  { %447 = vmatpush3.bf16.msra.mxu1 %v490_v8 }
  0x2b   :  { %448 = vmatprep.subr.bf16.mxu1 %v559_v0  ;;  %465 = vmatpush3.bf16.msra.mxu0 %v497_v15 }
  0x2c   :  { %466 = vmatprep.subr.bf16.mxu0 %v559_v0 }
  0x2e   :  { %449 = vmatpush3.bf16.msra.mxu1 %v491_v9 }
  0x2f   :  { %450 = vmatprep.subr.bf16.mxu1 %v559_v0  ;;  %467 = vmatpush3.bf16.msra.mxu0 %v498_v16 }
  0x30   :  { %468 = vmatprep.subr.bf16.mxu0 %v559_v0 }
  0x32   :  { %451 = vmatpush3.bf16.msra.mxu1 %v492_v10 }
  0x33   :  { %452 = vmatprep.subr.bf16.mxu1 %v559_v0  ;;  %469 = vmatpush3.bf16.msra.mxu0 %v499_v17 }
  0x34   :  { %470 = vmatprep.subr.bf16.mxu0 %v559_v0 }
  0x36   :  { %453 = vmatpush3.bf16.msra.mxu1 %v493_v11 }
  0x37   :  { %454 = vmatprep.subr.bf16.mxu1 %v559_v0  ;;  %471 = vmatpush3.bf16.msra.mxu0 %v500_v28 }
  0x38   :  { %472 = vmatprep.subr.bf16.mxu0 %v559_v0 }
  0x3a   :  { %455 = vmatpush3.bf16.msra.mxu1 %v494_v12 }
  0x3b   :  { %473 = vmatpush3.bf16.msra.mxu0 %v501_v29 }
  0x3c   :  { %474 = vmatprep.subr.bf16.mxu0 %v559_v0 }
  0x3f   :  { %475 = vmatpush3.bf16.msra.mxu0 %v502_v30 }
  0xe1   :  { %v111_v19 = vpop.f32.mrf.mxu0 }
  0xe2   :  { %v112_v21 = vadd.f32 %v384_v18, %v111_v19 }
  0xe3   :  { %v438_v20 = vpop.f32.mrf.mxu0 }
  0xe4   :  { %v118_v25 = vmax.f32 %v112_v21, 0.0 }
  0xe5   :  { %v114_v22 = vpop.f32.mrf.mxu0 }
  0xe6   :  { %v115_v23 = vadd.f32 %v384_v18, %v114_v22 }
  0xe7   :  { %v439_v24 = vpop.f32.mrf.mxu0 }
  0xe8   :  { %v119_v26 = vmax.f32 %v115_v23, 0.0 }
  0xea   :  { %v120_v27 = vpack.c.bf16 %v119_v26, %v118_v25 }
  0xec   :  { %457 = vmatmul.mubr.bf16.vlgmr.msra.gmra.mxu1 %v120_v27 }
 0x1ac   :  { %v226_v32 = vpop.f32.mrf.mxu1 }
 0x1ad   :  { %v227_v34 = vadd.f32 %v387_v31, %v226_v32 }
 0x1ae   :  { %v458_v33 = vpop.f32.mrf.mxu1 }
 0x1af   :  { %v233_v38 = vmax.f32 %v227_v34, 0.0 }
 0x1b0   :  { %v229_v35 = vpop.f32.mrf.mxu1 }
 0x1b1   :  { %v230_v36 = vadd.f32 %v387_v31, %v229_v35 }
 0x1b2   :  { %v459_v37 = vpop.f32.mrf.mxu1 }
 0x1b3   :  { %v234_v39 = vmax.f32 %v230_v36, 0.0 }
 0x1b5   :  { %v235_v40 = vpack.c.bf16 %v234_v39, %v233_v38 }
 0x1b7   :  { %477 = vmatmul.mubr.bf16.vlgmr.msra.gmra.mxu0 %v235_v40 }
 0x277   :  { %v341_v42 = vpop.f32.mrf.mxu0 }
 0x278   :  { %v342_v43 = vadd.f32 %v396_v41, %v341_v42 }
 0x279   :  { %v478_v44 = vpop.f32.mrf.mxu0 }
 0x27a   :  { %348 = vmax.xlane.f32.xlu0 %v342_v43 }
 0x27b   :  { %v344_v45 = vpop.f32.mrf.mxu0 }
 0x27c   :  { %v345_v46 = vadd.f32 %v396_v41, %v344_v45 }
 0x27d   :  { %v479_v47 = vpop.f32.mrf.mxu0 }
 0x27e   :  { %350 = vmax.xlane.f32.xlu0 %v345_v46 }
 0x303   :  { %v349_v48 = vpop.xlane.xlu0 %348 }
 0x304   :  { %v352_v49 = vsub.f32 %v342_v43, %v349_v48 }
 0x306   :  { %v354_v50 = vmul.f32 1.442695, %v352_v49 }
 0x307   :  { %v351_v51 = vpop.xlane.xlu0 %350 }
 0x308   :  { %v353_v52 = vsub.f32 %v345_v46, %v351_v51  ;;  %503 = vpow2.f32 %v354_v50 }
 0x30a   :  { %v356_v53 = vmul.f32 1.442695, %v353_v52 }
 0x30c   :  { %505 = vpow2.f32 %v356_v53 }
 0x315   :  { %v504_v54 = vpop.eup %503 }
 0x316   :  { %358 = vadd.xlane.f32.xlu1 %v504_v54 }
 0x319   :  { %v506_v55 = vpop.eup %505 }
 0x31a   :  { %360 = vadd.xlane.f32.xlu1 %v506_v55 }
 0x39f   :  { %v359_v56 = vpop.xlane.xlu1 %358 }
 0x3a0   :  { %507 = vlog2.f32 %v359_v56 }
 0x3a3   :  { %v361_v57 = vpop.xlane.xlu1 %360 }
 0x3a4   :  { %509 = vlog2.f32 %v361_v57 }
 0x3ad   :  { %v508_v58 = vpop.eup %507 }
 0x3ae   :  { %v363_v59 = vmul.f32 0.6931472, %v508_v58 }
 0x3b0   :  { %v366_v62 = vsub.f32 %v352_v49, %v363_v59 }
 0x3b1   :  { %v510_v60 = vpop.eup %509 }
 0x3b2   :  { %v365_v61 = vmul.f32 0.6931472, %v510_v60 }
 0x3b4   :  { %v367_v63 = vsub.f32 %v353_v52, %v365_v61 }
 0x3b6   :  { %v412_v0 = vpack.c.bf16 %v367_v63, %v366_v62 }
 0x3b8   :  { %413 = vst [vmem:[%s658_s7] sm:$0xff] %v412_v0  }
 0x3b9   :  { %382 = vsyncpa [#allocation3], 1 }
 0x3ba   :  { %383 = vsyncpa [#allocation5], 1 }

</bundles_post_ra>
